<compile_context>
chip_gen: v7x
topology: tpu7x:2x2x1
jax: 0.10.0
libtpu: 0.0.40
codegen_flags: <defaults>
</compile_context>

<pallas_src>
import functools

import jax
import jax.numpy as jnp
from jax.experimental import pallas as pl
from jax.experimental.pallas import tpu as pltpu

_MIB = 1024 * 1024


def _round_up(x, m):
    return ((x + m - 1) // m) * m


def _vmem_cap_bytes():
    # Generation-aware VMEM budget: ~80% of physical capacity (64 MiB on v7x,
    # 128 MiB on v5e/v6e), leaving headroom for Mosaic internal scratch.
    try:
        cap = pltpu.get_tpu_info().vmem_capacity_bytes
    except Exception:
        cap = 64 * _MIB
    return int(cap * 0.8)


def _patch_embed_kernel(p_ref, w_ref, b_ref, o_ref):
    # p_ref: (tm, K)     tile of flattened patches (f32 or bf16)
    # w_ref: (K, Eout)   full projection matrix (resident across the grid)
    # b_ref: (1, Eout)   bias (f32)
    # o_ref: (tm, Eout)  output tile
    acc = jnp.dot(p_ref[...], w_ref[...], preferred_element_type=jnp.float32)
    o_ref[...] = (acc + b_ref[...]).astype(o_ref.dtype)


def _projection_matmul(patches, w_mat, bias_row, *, tm, out_dtype):
    """patches: (M, K) @ w_mat: (K, E) + bias_row: (1, E) -> (M, E)."""
    M, K = patches.shape
    _, E = w_mat.shape
    grid = (pl.cdiv(M, tm),)  # ragged last tile: Pallas masks its writes

    in_bytes = patches.dtype.itemsize
    w_bytes = w_mat.dtype.itemsize
    out_bytes = jnp.dtype(out_dtype).itemsize

    # Double-buffered patch/output tiles + (double-buffered) resident weight + bias.
    # TODO(synk): on v7x, pipeline_mode=pl.Buffered(1) on the constant-index
    # weight/bias specs would halve their footprint; omitted to keep lowering safe.
    needed = (2 * tm * K * in_bytes
              + 2 * tm * E * out_bytes
              + 2 * K * E * w_bytes
              + 2 * E * bias_row.dtype.itemsize)
    vmem_limit = int(min(max(2 * needed, 32 * _MIB), _vmem_cap_bytes()))

    cost = pl.CostEstimate(
        flops=2 * M * K * E,
        transcendentals=0,
        bytes_accessed=(M * K * in_bytes + K * E * w_bytes
                        + E * bias_row.dtype.itemsize + M * E * out_bytes),
    )

    return pl.pallas_call(
        _patch_embed_kernel,
        out_shape=jax.ShapeDtypeStruct((M, E), out_dtype),
        grid_spec=pltpu.PrefetchScalarGridSpec(
            num_scalar_prefetch=0,
            grid=grid,
            in_specs=[
                pl.BlockSpec((tm, K), lambda i: (i, 0)),
                pl.BlockSpec((K, E), lambda i: (0, 0)),   # weight resident
                pl.BlockSpec((1, E), lambda i: (0, 0)),   # bias resident
            ],
            out_specs=pl.BlockSpec((tm, E), lambda i: (i, 0)),
        ),
        compiler_params=pltpu.CompilerParams(
            dimension_semantics=("parallel",),
            vmem_limit_bytes=vmem_limit,
        ),
        cost_estimate=cost,
    )(patches, w_mat, bias_row)


def patch_embed_forward(x, weight, bias, patch_size, *,
                        compute_dtype=jnp.bfloat16, out_dtype=None,
                        tm_target=1024):
    """JAX/Pallas equivalent of PatchEmbed.forward.

    x      : (B, C, H, W)  NCHW, like the torch module
    weight : (E, C, ph, pw) conv weight (kernel == stride == patch_size)
    bias   : (E,)           conv bias
    compute_dtype : dtype of the matmul operands (default bf16 — the patchify
                    transpose and MXU operands run in this dtype; accumulation
                    and bias add stay f32; numerics differ slightly from an
                    f32 conv).  Pass None for a full-f32 path.
    out_dtype     : output dtype (default: x.dtype).
    returns (tokens, Hp, Wp) with tokens of shape (B, Hp*Wp, E)
    """
    ph, pw = patch_size
    B, C, H, W = x.shape
    E = weight.shape[0]
    if out_dtype is None:
        out_dtype = x.dtype

    # Cast operands BEFORE padding / patchify so the XLA-side transpose (a full
    # HBM round trip of the dominant stream) reads and writes half the bytes.
    if compute_dtype is not None:
        x = x.astype(compute_dtype)
        weight = weight.astype(compute_dtype)

    # F.pad(x, (0, pad_w, 0, pad_h, 0, 0)) -> pad right/bottom of W, H with 0
    pad_h = (-H) % ph
    pad_w = (-W) % pw
    if pad_h or pad_w:
        x = jnp.pad(x, ((0, 0), (0, 0), (0, pad_h), (0, pad_w)))
    Hp = (H + pad_h) // ph
    Wp = (W + pad_w) // pw

    # Patchify: (B, C, Hp, ph, Wp, pw) -> (B, Hp, Wp, C, ph, pw) -> (M, K).
    # TODO(synk): this 6-D transpose is an XLA-side HBM round trip of the input;
    # a fused in-kernel patchify (per-(c, row) strided gather + K-accumulation
    # grid axis) would remove it but is a lowering risk when pw < 128 lanes.
    K = C * ph * pw
    M = B * Hp * Wp
    xp = x.reshape(B, C, Hp, ph, Wp, pw).transpose(0, 2, 4, 1, 3, 5)
    patches = xp.reshape(M, K)

    # Conv weight (E, C, ph, pw) -> (C*ph*pw, E); matches (C, ph, pw) flatten order.
    w_mat = weight.reshape(E, K).T
    b_row = bias.reshape(1, E).astype(jnp.float32)

    # Align K only when it is not 8-aligned (pad rides the patchify pass; both
    # BlockSpecs are legal either way since K is a full array dim).
    if K % 8 != 0:
        Kpad = _round_up(K, 128)
        patches = jnp.pad(patches, ((0, 0), (0, Kpad - K)))
        w_mat = jnp.pad(w_mat, ((0, Kpad - K), (0, 0)))
        K = Kpad

    # Lane-dense output only when E < 128 (mostly-masked vst otherwise); for
    # larger non-128-multiple E the extra column-slice HBM pass costs more than
    # one masked trailing vreg store per row.
    Eout = _round_up(E, 128) if E < 128 else E
    if Eout != E:
        w_mat = jnp.pad(w_mat, ((0, 0), (0, Eout - E)))
        b_row = jnp.pad(b_row, ((0, 0), (0, Eout - E)))

    # Large M tile amortizes per-grid-step overhead; no M padding — the ragged
    # last tile's writes are masked by Pallas.  Keep >= 2 grid steps when
    # possible so both v7x TensorCores get work on the 'parallel' axis.
    tm = min(tm_target, _round_up(M, 8))
    if pl.cdiv(M, tm) < 2 and M > 8:
        tm = _round_up(pl.cdiv(M, 2), 8)

    out = _projection_matmul(patches, w_mat, b_row, tm=tm, out_dtype=out_dtype)
    if Eout != E:
        out = out[:, :E]
    tokens = out.reshape(B, Hp * Wp, E)
    # norm_layer=None -> nn.Identity(), nothing to do.
    return tokens, Hp, Wp


def _reference_forward(x, weight, bias, patch_size):
    """Pure-JAX reference (lax conv) for correctness checking."""
    ph, pw = patch_size
    B, C, H, W = x.shape
    pad_h = (-H) % ph
    pad_w = (-W) % pw
    if pad_h or pad_w:
        x = jnp.pad(x, ((0, 0), (0, 0), (0, pad_h), (0, pad_w)))
    y = jax.lax.conv_general_dilated(
        x, weight, window_strides=(ph, pw), padding="VALID",
        dimension_numbers=("NCHW", "OIHW", "NCHW"))
    y = y + bias.reshape(1, -1, 1, 1)
    B2, E, Hp, Wp = y.shape
    tokens = y.reshape(B2, E, Hp * Wp).transpose(0, 2, 1)
    return tokens, Hp, Wp


if __name__ == "__main__":
    key = jax.random.PRNGKey(0)
    k_x, k_w, k_b = jax.random.split(key, 3)

    # Small shapes: B=2, C=4, H=W=16, patch_size=4, embed_dim=32
    patch_size = (4, 4)
    B, C, H, W = 2, 4, 16, 16
    embed_dim = 32

    x = jax.random.normal(k_x, (B, C, H, W), dtype=jnp.float32)
    weight = jax.random.normal(
        k_w, (embed_dim, C, patch_size[0], patch_size[1]), dtype=jnp.float32) * 0.05
    bias = jax.random.normal(k_b, (embed_dim,), dtype=jnp.float32) * 0.05

    ref_tokens, ref_Hp, ref_Wp = _reference_forward(x, weight, bias, patch_size)

    # f32 operand path (tight check).
    fwd_f32 = jax.jit(functools.partial(
        patch_embed_forward, patch_size=patch_size, compute_dtype=None))
    tokens, Hp, Wp = fwd_f32(x, weight, bias)
    tokens = jax.block_until_ready(tokens)

    assert tokens.shape == (B, Hp * Wp, embed_dim)
    assert (Hp, Wp) == (ref_Hp, ref_Wp) == (H // patch_size[0], W // patch_size[1])
    assert jnp.allclose(tokens, ref_tokens, atol=1e-4, rtol=1e-4)

    # Default bf16-operand path (f32 accumulation, operands cast before the
    # patchify transpose) — loose check.
    fwd_bf16 = jax.jit(functools.partial(patch_embed_forward, patch_size=patch_size))
    tokens_bf16, _, _ = fwd_bf16(x, weight, bias)
    tokens_bf16 = jax.block_until_ready(tokens_bf16)
    assert jnp.allclose(tokens_bf16, ref_tokens, atol=1e-1, rtol=1e-1)

    print("KERNEL_OK")
</pallas_src>

<mosaic_0001>
module attributes {stable_mosaic.version = 11 : i64} {
  func.func @_patch_embed_kernel(%arg0: i32, %arg1: memref<16x64xf32, #tpu.memory_space<vmem>>, %arg2: memref<64x128xf32, #tpu.memory_space<vmem>>, %arg3: memref<1x128xf32, #tpu.memory_space<vmem>>, %arg4: memref<16x128xf32, #tpu.memory_space<vmem>>) attributes {dimension_semantics = [#tpu.dimension_semantics<parallel>], iteration_bounds = array<i64: 2>, scalar_prefetch = 0 : i64, scratch_operands = 0 : i64, tpu.core_type = #tpu.core_type<tc>, window_params = [{transform_indices = @transform_0, window_bounds = array<i64: 16, 64>}, {pipeline_mode = #tpu.pipeline_mode<synchronous>, transform_indices = @transform_1, window_bounds = array<i64: 64, 128>}, {pipeline_mode = #tpu.pipeline_mode<synchronous>, transform_indices = @transform_2, window_bounds = array<i64: 1, 128>}, {transform_indices = @transform_3, window_bounds = array<i64: 16, 128>}]} {
    %c0 = arith.constant 0 : index
    %c0_0 = arith.constant 0 : index
    %0 = vector.load %arg1[%c0, %c0_0] : memref<16x64xf32, #tpu.memory_space<vmem>>, vector<16x64xf32>
    %c0_1 = arith.constant 0 : index
    %c0_2 = arith.constant 0 : index
    %1 = vector.load %arg2[%c0_1, %c0_2] : memref<64x128xf32, #tpu.memory_space<vmem>>, vector<64x128xf32>
    %cst = arith.constant dense<0.000000e+00> : vector<16x128xf32>
    %2 = tpu.matmul %0, %1, %cst {dimension_numbers = #tpu.dot_dimension_numbers<[1], [0], [0], [1], [0, 0, 1, 1], [], []>} : vector<16x64xf32>, vector<64x128xf32>, vector<16x128xf32> -> vector<16x128xf32>
    %c0_3 = arith.constant 0 : index
    %c0_4 = arith.constant 0 : index
    %3 = vector.load %arg3[%c0_3, %c0_4] : memref<1x128xf32, #tpu.memory_space<vmem>>, vector<1x128xf32>
    %4 = vector.broadcast %3 : vector<1x128xf32> to vector<16x128xf32>
    %5 = arith.addf %2, %4 : vector<16x128xf32>
    %c0_5 = arith.constant 0 : index
    %c0_6 = arith.constant 0 : index
    %6 = vector.load %arg4[%c0_5, %c0_6] : memref<16x128xf32, #tpu.memory_space<vmem>>, vector<16x128xf32>
    tpu.vector_store %arg4[%c0_5, %c0_6], %5 {strides = array<i32>} : memref<16x128xf32, #tpu.memory_space<vmem>>, vector<16x128xf32>,
    return
  }
  func.func @transform_0(%arg0: i32) -> (i32, i32) {
    %c0_i32 = arith.constant 0 : i32
    %c0_i32_0 = arith.constant 0 : i32
    return %arg0, %c0_i32 : i32, i32
  }
  func.func @transform_1(%arg0: i32) -> (i32, i32) {
    %c0_i32 = arith.constant 0 : i32
    %c0_i32_0 = arith.constant 0 : i32
    %c0_i32_1 = arith.constant 0 : i32
    return %c0_i32, %c0_i32_0 : i32, i32
  }
  func.func @transform_2(%arg0: i32) -> (i32, i32) {
    %c0_i32 = arith.constant 0 : i32
    %c0_i32_0 = arith.constant 0 : i32
    %c0_i32_1 = arith.constant 0 : i32
    return %c0_i32, %c0_i32_0 : i32, i32
  }
  func.func @transform_3(%arg0: i32) -> (i32, i32) {
    %c0_i32 = arith.constant 0 : i32
    %c0_i32_0 = arith.constant 0 : i32
    return %arg0, %c0_i32 : i32, i32
  }
}

</mosaic_0001>

<bundles_post_ra>
// kernel: patch_embed_forward.1
= control target key start
LH: loop header
LB: loop body
LE: loop exit
PB: predicated region body
PF: predicated region fallthrough
CT: control target
= control target key end

     0   :  { %8 = vsyncpa [#allocation3], 0  ;;  %s667_s0 = inlined_call_operand.vmem [shape: f32[32,64], index: 0, kind: input, shape index: {}]   ;;  %s668_s1 = inlined_call_operand.vmem [shape: f32[64,128], index: 1, kind: input, shape index: {}]   ;;  %s669_s2 = inlined_call_operand.vmem [shape: f32[1,128], index: 2, kind: input, shape index: {}]   ;;  %s670_s3 = inlined_call_operand.hbm [shape: f32[32,128], index: 3, kind: output, shape index: {}]  }
   0x1   :  { %10 = vsyncpa [#allocation3 + $0x1], 0  ;;  %s538_s12 = smov 0   ;;  %s540_s13 = smov 0  }
   0x2   :  { %s542_s14 = smov 0   ;;  %s544_s15 = smov 0  }
   0x3 LB: > { %s559_s16 = sadd.s32 4294967295, %s513_s15   ;;  %s349_s17 = sadd.s32 4294967294, %s513_s15   ;;  %s513_s15 = sphi %s544_s15, %s676_s15   ;;  %s509_s14 = sphi %s542_s14, %s675_s14   ;;  %s505_s13 = sphi %s540_s13, %s674_s13   ;;  %s501_s12 = sphi %s538_s12, %s673_s12  }
   0x4   : > { %s563_s18 = sadd.s32 1, %s513_s15   ;;  %s91_s19 = sadd.s32 1, %s509_s14 }
   0x5   : > { %s88_s20 = ssub.s32 %s513_s15, %s563_s18  ;;  %p101_p0 = scmp.ne.s32.totalorder %s509_s14, %s505_s13 }
   0x6   : > { %p89_p1 = scmp.eq.s32.totalorder %s88_s20, 0  ;;  %p102_p2 = scmp.eq.s32.totalorder %s559_s16, 1 }
   0x7   : > { %p107_p3 = scmp.ne.s32.totalorder %s505_s13, %s501_s12  ;;  %p108_p4 = scmp.eq.s32.totalorder %s349_s17, 1 }
   0x8   : > { %s574_s21 = scalar_select %p89_p1, %s509_s14, %s91_s19  }
   0x9   : > { %p576_p5 = por %p102_p2, %p101_p0  ;;  %p580_p6 = por %p108_p4, %p107_p3 }
   0xa   : > { %p352_p7 = scmp.ge.s32.totalorder %s513_s15, 1  ;;  %p141_p8 = scmp.lt.s32.totalorder %s513_s15, 3 }
   0xc   : > { %p142_p9 = pnand %p352_p7, %p141_p8 }
   0xd   : > { %v174_v0 = vld [vmem:[%s668_s1] sm:$0xff] (!%p142_p9)  ;;  %v175_v1 = vld [vmem:[%s668_s1 + $0x8] sm:$0xff] (!%p142_p9)  ;;  %v176_v2 = vld [vmem:[%s668_s1 + $0x10] sm:$0xff] (!%p142_p9)  ;;  %s354_s30 = sshll.u32 (!%p142_p9), %s559_s16, 1  ;;  %vm189_vm0 = vcmask (!%p142_p9), 523264   ;;  %s162_s27 = sand.u32 (!%p142_p9), 1, %s505_s13  }
   0xe   : > { %145 = sbr.rel (%p142_p9) target bundleno = 262 (0x106), region = 32  ;;  %v394_v3 = vpack.c.bf16 (!%p142_p9), %v175_v1, %v174_v0  ;;  %v177_v4 = vld [vmem:[%s668_s1 + $0x18] sm:$0xff] (!%p142_p9)  ;;  %p166_p10 = scmp.lt.s32.totalorder (!%p142_p9), %s354_s30, 3  ;;  %v178_v6 = vld [vmem:[%s668_s1 + $0x20] sm:$0xff] (!%p142_p9)  ;;  %v179_v7 = vld [vmem:[%s668_s1 + $0x28] sm:$0xff] (!%p142_p9) }
   0xf   : > { %v398_v5 = vpack.c.bf16 (!%p142_p9), %v177_v4, %v176_v2  ;;  %v402_v8 = vpack.c.bf16 (!%p142_p9), %v179_v7, %v178_v6  ;;  %v180_v9 = vld [vmem:[%s668_s1 + $0x30] sm:$0xff] (!%p142_p9)  ;;  %v181_v10 = vld [vmem:[%s668_s1 + $0x38] sm:$0xff] (!%p142_p9)  ;;  %s353_s28 = sshll.u32 (!%p142_p9), %s162_s27, 4  ;;  %v356_v14 = vld [vmem:[%s669_s2] ss:$0 sm:$0xff] (!%p142_p9)  ;;  %s364_s6 = sshll.u32 (!%p142_p9), %s559_s16, 8 }
  0x10   : > { %395 = vmatprep.subr.bf16.mxu0 (!%p142_p9), %v394_v3  ;;  %v406_v12 = vpack.c.bf16 (!%p142_p9), %v181_v10, %v180_v9  ;;  %s164_s4 = scalar_lea.vmem (!%p142_p9), [#allocation2], %s353_s28  ;;  %s624_s9 = scalar_lea.hbm (!%p142_p9), %s670_s3, %s364_s6 }
  0x11   : > { %397 = vmatpush3.bf16.msra.mxu0 (!%p142_p9), %v394_v3  ;;  %s287_s5 = sshll.u32 (!%p142_p9), %s164_s4, 4  ;;  %s515_s16 = smov (!%p142_p9), [#allocation2]   ;;  %s619_s5 = int_to_ptr.vmem [resolvable:$true] %s287_s5 }
  0x12   : > { %399 = vmatprep.subr.bf16.mxu0 (!%p142_p9), %v398_v5  ;;  %s451_s11 = scalar_lea.vmem (!%p142_p9), %s619_s5, 256  ;;  %s455_s17 = sshll.u32 (!%p142_p9), %s515_s16, 4  ;;  %s456_s17 = int_to_ptr.vmem [resolvable:$false] %s455_s17 }
  0x13   : > { %p452_p11 = scmp.ne.s32.totalorder (!%p142_p9), %s619_s5, %s451_s11  ;;  %s457_s19 = scalar_lea.vmem (!%p142_p9), %s456_s17, 512 }
  0x14   : > { %p458_p0 = scmp.lt.s32.totalorder (!%p142_p9), %s619_s5, %s456_s17  ;;  %p459_p1 = scmp.lt.s32.totalorder (!%p142_p9), %s457_s19, %s451_s11 }
  0x15   : > { %s678_s30 = smov (!%p166_p10, %s354_s30), 3  ;;  %401 = vmatpush3.bf16.msra.mxu0 %v398_v5  ;;  %p453_p12 = pnand %p452_p11, %p576_p5 }
  0x16   : > { %s355_s10 = sshll.u32 %s678_s30, 3  ;;  %403 = vmatprep.subr.bf16.mxu0 %v402_v8  ;;  %p460_p2 = por %p459_p1, %p458_p0 }
  0x17   : > { %s169_s26 = scalar_lea.vmem %s667_s0, %s355_s10  ;;  %s626_s10 = scalar_lea.sflag [#allocation3], %s162_s27 }
  0x18   : > { %v172_v11 = vld [vmem:[%s169_s26] sm:$0xff]  ;;  %v173_v13 = vld [vmem:[%s169_s26 + $0x8] sm:$0xff]  ;;  %p454_p13 = pneg %p453_p12 }
  0x19   : > { %391 = vmatprep.mubr.msk.f32.mxu0 %vm189_vm0, %v172_v11  ;;  %405 = vmatpush3.bf16.msra.mxu0 %v402_v8 }
  0x1a   : > { %407 = vmatprep.subr.bf16.mxu0 %v406_v12  ;;  %p461_p3 = pnand %p460_p2, %p454_p13 }
  0x1d   : > { %409 = vmatpush3.bf16.msra.mxu0 %v406_v12 }
  0x20   : > { %392 = vmatmul.mubr.msk.f32.vlgmr.msra.gmra.mrb[0].mxu0 %vm189_vm0, %v173_v13 }
  0xf3   : > { %v393_v15 = vpop.f32.mrb[0].mxu0 }
  0xf4   : > { %v268_v16 = vadd.f32 %v393_v15, %v356_v14  ;;  %v262_v17 = vpop.f32.mrb[1].mxu0 }
  0xf5   : > { %v263_v18 = vadd.f32 %v356_v14, %v262_v17 }
  0xf6   : > { %272 = vst [vmem:[%s164_s4 + $0x8] sm:$0xff] %v268_v16 }
  0xf7   : > { %271 = vst [vmem:[%s164_s4] sm:$0xff] %v263_v18 }
  0xf8   : > { %464 = shalt.err (!%p461_p3)
}
  0xf9   : > { %s465_s20 = scalar_lea.hbm %s624_s9, 256  ;;  %s469_s26 = scalar_lea.hbm %s670_s3, 512 }
  0xfa   : > { %p466_p4 = scmp.ne.s32.totalorder %s624_s9, %s465_s20  ;;  %p470_p9 = scmp.lt.u32.totalorder %s624_s9, %s670_s3 }
  0xfb   : > { %p471_p10 = scmp.lt.u32.totalorder %s469_s26, %s465_s20  ;;  %p473_p12 = scmp.lt.u32.totalorder %s465_s20, %s624_s9 }
  0xfc   : > { %p467_p7 = pnand %p466_p4, %p576_p5 }
  0xfd   : > { %p472_p11 = por %p471_p10, %p470_p9 }
  0xfe   : > { %p468_p8 = pneg %p467_p7 }
  0xff   : > { %p474_p13 = por %p473_p12, %p472_p11 }
 0x101   : > { %p475_p0 = pnand %p474_p13, %p468_p8 }
 0x103   : > { %478 = shalt.err (!%p475_p0)
}
 0x104   : > { %s516_s29 = smov 128   ;;  %s517_s30 = smov 8  }
 0x105   : > { %410 = dma.vmem_to_hbm [thread:$0]  (%p576_p5), %s619_s5, 256, %s624_s9, %s626_s10, %s516_s29, %s516_s29, %s517_s30  }
 0x106 PF: > { %p416_p1 = scmp.ge.s32.totalorder %s513_s15, 2  ;;  %s302_s4 = sand.u32 1, %s501_s12  }
 0x107   : > { %s303_s6 = scalar_lea.sflag [#allocation3], %s302_s4 }
 0x108   : > { %p413_p2 = pnand %p416_p1, %p580_p6 }
 0x10a   : > { %496 = dma.done.wait (!%p413_p2), %s303_s6, 256  }
 0x10b   : > { %498 = vsyncadd (!%p413_p2), %s303_s6, 4294967040  ;;  %p13_p3 = scmp.ge.s32.totalorder %s563_s18, 4   ;;  %s673_s12 = smov %s505_s13 }
 0x10c   : > { %s674_s13 = smov %s509_s14  ;;  %s675_s14 = smov %s574_s21 }
 0x10d   : > { %s676_s15 = smov %s563_s18  ;;  %15 = sbr.rel (!%p13_p3) target bundleno = 3 (0x3), region = 67 }
 0x114   :  { %308 = vsyncpa [#allocation3], 1 }
 0x115   :  { %310 = vsyncpa [#allocation3 + $0x1], 1 }

</bundles_post_ra>
